<compile_context>
chip_gen: v7x
topology: tpu7x:2x2x1
jax: 0.10.0
libtpu: 0.0.40
codegen_flags: <defaults>
</compile_context>

<pallas_src>
import functools

import jax
import jax.numpy as jnp
from jax.experimental import pallas as pl
from jax.experimental.pallas import tpu as pltpu

BN_EPS = 1e-5
LANE = 128
SUBLANE = 8
NUM_CLASSES = 10
NEG_INF = -1e9          # bias padding for fake class lanes -> exp underflows to 0


def _round_up(n, m):
    return (n + m - 1) // m * m


# ---------------------------------------------------------------------------
# Kernels
# ---------------------------------------------------------------------------
def _fused_kernel(x_ref, w0_ref, gamma_ref, beta_ref, w1_ref, b1_ref,
                  w2_ref, b2_ref, out_ref, *, inv_batch):
    # fc0 (bias dropped: BN subtracts the batch mean, so b0 is a no-op)
    h0 = jnp.dot(x_ref[...], w0_ref[...], preferred_element_type=jnp.float32)

    # BatchNorm1d, one-pass stats over the true batch (padded rows are all-zero
    # so they contribute nothing to the sums; we divide by the true batch size).
    mean = jnp.sum(h0, axis=0, keepdims=True) * inv_batch
    ex2 = jnp.sum(h0 * h0, axis=0, keepdims=True) * inv_batch
    var = jnp.maximum(ex2 - mean * mean, 0.0)
    scale = jax.lax.rsqrt(var + BN_EPS) * gamma_ref[...]      # (1,128)
    shift = beta_ref[...] - mean * scale                      # (1,128)
    h0 = jnp.maximum(h0 * scale + shift, 0.0)                 # BN + ReLU (1 FMA-ish)

    # fc1 + ReLU
    w1 = w1_ref[...]
    h1 = jnp.dot(h0.astype(w1.dtype), w1,
                 preferred_element_type=jnp.float32) + b1_ref[...]
    h1 = jnp.maximum(h1, 0.0)

    # fc2 (padded class lanes carry a -1e9 bias -> vanish from the softmax)
    w2 = w2_ref[...]
    h2 = jnp.dot(h1.astype(w2.dtype), w2,
                 preferred_element_type=jnp.float32) + b2_ref[...]

    # log_softmax along the lane (class) dim
    m = jnp.max(h2, axis=1, keepdims=True)
    s = h2 - m
    lse = jnp.log(jnp.sum(jnp.exp(s), axis=1, keepdims=True))
    out_ref[...] = s - lse


def _stats_kernel(x_ref, w0_ref, h0_ref, sum_ref, sumsq_ref):
    """Pass 1 (batch-tiled): h0 = x @ w0 per tile, accumulate global sum/sum-sq."""
    h0 = jnp.dot(x_ref[...], w0_ref[...], preferred_element_type=jnp.float32)
    h0_ref[...] = h0

    @pl.when(pl.program_id(0) == 0)
    def _():
        sum_ref[...] = jnp.zeros_like(sum_ref)
        sumsq_ref[...] = jnp.zeros_like(sumsq_ref)

    sum_ref[...] += jnp.sum(h0, axis=0, keepdims=True)
    sumsq_ref[...] += jnp.sum(h0 * h0, axis=0, keepdims=True)


def _tail_kernel(h0_ref, scale_ref, shift_ref, w1_ref, b1_ref, w2_ref, b2_ref,
                 out_ref):
    """Pass 2 (batch-tiled, parallel): folded BN + fc1 + fc2 + log_softmax."""
    h0 = jnp.maximum(h0_ref[...] * scale_ref[...] + shift_ref[...], 0.0)
    w1 = w1_ref[...]
    h1 = jnp.maximum(jnp.dot(h0.astype(w1.dtype), w1,
                             preferred_element_type=jnp.float32) + b1_ref[...], 0.0)
    w2 = w2_ref[...]
    h2 = jnp.dot(h1.astype(w2.dtype), w2,
                 preferred_element_type=jnp.float32) + b2_ref[...]
    m = jnp.max(h2, axis=1, keepdims=True)
    s = h2 - m
    lse = jnp.log(jnp.sum(jnp.exp(s), axis=1, keepdims=True))
    out_ref[...] = s - lse


# ---------------------------------------------------------------------------
# Parameter preparation (pad to lane-aligned shapes, cast matmul operands)
# ---------------------------------------------------------------------------
def prepare_params(params, matmul_dtype=jnp.bfloat16):
    """Pad/cast once, outside the hot path.

    Returns (w0p, gammap, betap, w1p, b1p, w2p, b2p):
      w0p (Dp,128), gammap/betap (1,128) f32, w1p (128,128), b1p (1,128) f32,
      w2p (128,128), b2p (1,128) f32 (padded class lanes biased to -1e9).
    fc0's bias is dropped: BN's batch-mean subtraction cancels it exactly.
    """
    w0, _b0, gamma, beta, w1, b1, w2, b2 = params
    D = w0.shape[0]
    Dp = _round_up(D, LANE)

    def pad2(a, rows, cols):
        return jnp.pad(a, ((0, rows - a.shape[0]), (0, cols - a.shape[1])))

    w0p = pad2(w0, Dp, LANE).astype(matmul_dtype)
    gammap = pad2(gamma, 1, LANE).astype(jnp.float32)   # padded gamma=0 -> padded h0 stays 0
    betap = pad2(beta, 1, LANE).astype(jnp.float32)
    w1p = pad2(w1, LANE, LANE).astype(matmul_dtype)
    b1p = pad2(b1, 1, LANE).astype(jnp.float32)
    w2p = pad2(w2, LANE, LANE).astype(matmul_dtype)
    b2p = pad2(b2, 1, LANE).astype(jnp.float32)
    col = jnp.arange(LANE)[None, :]
    b2p = jnp.where(col < NUM_CLASSES, b2p, jnp.float32(NEG_INF))
    return (w0p, gammap, betap, w1p, b1p, w2p, b2p)


# ---------------------------------------------------------------------------
# Forward
# ---------------------------------------------------------------------------
@functools.partial(jax.jit, static_argnames=("image_size", "batch_block"))
def modelc_forward(x, prepared, *, image_size, batch_block=None):
    """x: any shape flattening to (B, image_size). prepared: from prepare_params."""
    w0p, gammap, betap, w1p, b1p, w2p, b2p = prepared
    Dp = w0p.shape[0]
    mm_dtype = w0p.dtype

    x2d = x.reshape(-1, image_size).astype(jnp.float32)      # x.view(-1, D)
    B = x2d.shape[0]

    # Path selection (static): single fused VMEM block for small/medium B,
    # batch-tiled two-pass pipeline otherwise (BN needs global batch stats and
    # the whole (B, D) block would not fit v7x's 64 MiB VMEM at large B).
    if batch_block is None:
        Bp8 = _round_up(B, SUBLANE)
        fused_bytes = Bp8 * Dp * w0p.dtype.itemsize + 4 * Bp8 * LANE * 4
        batch_block = 0 if fused_bytes <= (8 << 20) else 1024

    weight_bytes = sum(int(p.size) * p.dtype.itemsize for p in prepared)

    if batch_block == 0:
        # ----- fused single-block path -----
        Bp = _round_up(B, SUBLANE)
        xp = jnp.pad(x2d, ((0, Bp - B), (0, Dp - image_size))).astype(mm_dtype)

        full = lambda s: pl.BlockSpec(s, lambda: (0,) * len(s))
        out = pl.pallas_call(
            functools.partial(_fused_kernel, inv_batch=1.0 / B),
            out_shape=jax.ShapeDtypeStruct((Bp, LANE), jnp.float32),
            in_specs=[full(xp.shape), full(w0p.shape), full(gammap.shape),
                      full(betap.shape), full(w1p.shape), full(b1p.shape),
                      full(w2p.shape), full(b2p.shape)],
            out_specs=full((Bp, LANE)),
            cost_estimate=pl.CostEstimate(
                flops=2 * Bp * (Dp * LANE + LANE * LANE + LANE * LANE),
                transcendentals=Bp * LANE + 2 * Bp + LANE,
                bytes_accessed=int(xp.size) * xp.dtype.itemsize
                               + weight_bytes + Bp * LANE * 4),
        )(xp, w0p, gammap, betap, w1p, b1p, w2p, b2p)
        return out[:B, :NUM_CLASSES]

    # ----- batch-tiled two-pass path -----
    TB = _round_up(batch_block, SUBLANE)
    Bp = _round_up(B, TB)
    n_tiles = Bp // TB
    xp = jnp.pad(x2d, ((0, Bp - B), (0, Dp - image_size))).astype(mm_dtype)

    # Pass 1: per-tile h0 = x @ w0 and global sum / sum-of-squares accumulation.
    h0, s1, s2 = pl.pallas_call(
        _stats_kernel,
        grid=(n_tiles,),
        out_shape=(jax.ShapeDtypeStruct((Bp, LANE), jnp.float32),
                   jax.ShapeDtypeStruct((1, LANE), jnp.float32),
                   jax.ShapeDtypeStruct((1, LANE), jnp.float32)),
        in_specs=[pl.BlockSpec((TB, Dp), lambda i: (i, 0)),
                  pl.BlockSpec((Dp, LANE), lambda i: (0, 0))],
        out_specs=(pl.BlockSpec((TB, LANE), lambda i: (i, 0)),
                   pl.BlockSpec((1, LANE), lambda i: (0, 0)),
                   pl.BlockSpec((1, LANE), lambda i: (0, 0))),
        compiler_params=pltpu.CompilerParams(
            dimension_semantics=("arbitrary",)),
        cost_estimate=pl.CostEstimate(
            flops=2 * Bp * Dp * LANE, transcendentals=0,
            bytes_accessed=int(xp.size) * xp.dtype.itemsize
                           + int(w0p.size) * w0p.dtype.itemsize
                           + (Bp + 2) * LANE * 4),
    )(xp, w0p)

    # Fold BN into one scale/shift ((1,128) math, negligible, done in XLA).
    mean = s1 * (1.0 / B)                       # padded rows contribute zeros
    var = jnp.maximum(s2 * (1.0 / B) - mean * mean, 0.0)
    scale = jax.lax.rsqrt(var + BN_EPS) * gammap
    shift = betap - mean * scale

    # Pass 2: normalize + fc1 + fc2 + log_softmax, batch-parallel (megacore).
    out = pl.pallas_call(
        _tail_kernel,
        grid=(n_tiles,),
        out_shape=jax.ShapeDtypeStruct((Bp, LANE), jnp.float32),
        in_specs=[pl.BlockSpec((TB, LANE), lambda i: (i, 0)),
                  pl.BlockSpec((1, LANE), lambda i: (0, 0)),
                  pl.BlockSpec((1, LANE), lambda i: (0, 0)),
                  pl.BlockSpec((LANE, LANE), lambda i: (0, 0)),
                  pl.BlockSpec((1, LANE), lambda i: (0, 0)),
                  pl.BlockSpec((LANE, LANE), lambda i: (0, 0)),
                  pl.BlockSpec((1, LANE), lambda i: (0, 0))],
        out_specs=pl.BlockSpec((TB, LANE), lambda i: (i, 0)),
        compiler_params=pltpu.CompilerParams(
            dimension_semantics=("parallel",)),
        cost_estimate=pl.CostEstimate(
            flops=4 * Bp * LANE * LANE,
            transcendentals=Bp * LANE + 2 * Bp,
            bytes_accessed=2 * Bp * LANE * 4
                           + 2 * LANE * LANE * w1p.dtype.itemsize
                           + 4 * LANE * 4),
    )(h0, scale, shift, w1p, b1p, w2p, b2p)
    return out[:B, :NUM_CLASSES]


# ---------------------------------------------------------------------------
# Init + pure-JAX reference (PyTorch semantics) + self-test
# ---------------------------------------------------------------------------
def init_params(key, image_size):
    """PyTorch-Linear-style uniform init; weights stored as (in, out)."""
    def linear(key, fan_in, fan_out):
        kw, kb = jax.random.split(key)
        bound = 1.0 / jnp.sqrt(fan_in)
        w = jax.random.uniform(kw, (fan_in, fan_out), jnp.float32, -bound, bound)
        b = jax.random.uniform(kb, (1, fan_out), jnp.float32, -bound, bound)
        return w, b

    k0, k1, k2 = jax.random.split(key, 3)
    w0, b0 = linear(k0, image_size, 100)
    w1, b1 = linear(k1, 100, 50)
    w2, b2 = linear(k2, 50, 10)
    gamma = jnp.ones((1, 100), jnp.float32)
    beta = jnp.zeros((1, 100), jnp.float32)
    return (w0, b0, gamma, beta, w1, b1, w2, b2)


def _reference(x, params, image_size):
    x = x.reshape(-1, image_size).astype(jnp.float32)
    w0, b0, gamma, beta, w1, b1, w2, b2 = params
    h = x @ w0 + b0
    mu = h.mean(0, keepdims=True)
    var = ((h - mu) ** 2).mean(0, keepdims=True)
    h = (h - mu) / jnp.sqrt(var + BN_EPS) * gamma + beta
    h = jnp.maximum(h, 0.0)
    h = jnp.maximum(h @ w1 + b1, 0.0)
    h = h @ w2 + b2
    return jax.nn.log_softmax(h, axis=1)


if __name__ == "__main__":
    image_size = 64                  # e.g. 1x8x8 images flattened
    batch = 8

    key = jax.random.PRNGKey(0)
    kx, kp, kb = jax.random.split(key, 3)
    x = jax.random.normal(kx, (batch, 1, 8, 8), jnp.float32)   # NCHW-style input
    params = init_params(kp, image_size)
    ref = _reference(x, params, image_size)

    # f32-matmul fused path: tight check against the PyTorch-semantics reference.
    prep_f32 = prepare_params(params, matmul_dtype=jnp.float32)
    out_f32 = jax.block_until_ready(
        modelc_forward(x, prep_f32, image_size=image_size))
    assert out_f32.shape == (batch, 10)
    assert jnp.allclose(out_f32, ref, atol=2e-4, rtol=2e-4), "f32 path mismatch"

    # bf16-matmul fused path (default; native MXU dtype on v5e/v6e/v7x).
    prep_bf16 = prepare_params(params)            # matmul_dtype=bfloat16
    out_bf16 = jax.block_until_ready(
        modelc_forward(x, prep_bf16, image_size=image_size))
    assert out_bf16.shape == (batch, 10)
    assert jnp.allclose(out_bf16, ref, atol=5e-2, rtol=5e-2), "bf16 path mismatch"

    # Batch-tiled two-pass path (what large B on v7x would use), exercised small.
    x_big = jax.random.normal(kb, (40, 1, 8, 8), jnp.float32)
    ref_big = _reference(x_big, params, image_size)
    out_big = jax.block_until_ready(
        modelc_forward(x_big, prep_f32, image_size=image_size, batch_block=16))
    assert out_big.shape == (40, 10)
    assert jnp.allclose(out_big, ref_big, atol=2e-4, rtol=2e-4), "tiled path mismatch"

    print("KERNEL_OK")
</pallas_src>

<mosaic_0001>
module attributes {stable_mosaic.version = 11 : i64} {
  func.func @_fused_kernel(%arg0: memref<8x128xf32, #tpu.memory_space<vmem>>, %arg1: memref<128x128xf32, #tpu.memory_space<vmem>>, %arg2: memref<1x128xf32, #tpu.memory_space<vmem>>, %arg3: memref<1x128xf32, #tpu.memory_space<vmem>>, %arg4: memref<128x128xf32, #tpu.memory_space<vmem>>, %arg5: memref<1x128xf32, #tpu.memory_space<vmem>>, %arg6: memref<128x128xf32, #tpu.memory_space<vmem>>, %arg7: memref<1x128xf32, #tpu.memory_space<vmem>>, %arg8: memref<8x128xf32, #tpu.memory_space<vmem>>) attributes {dimension_semantics = [], scalar_prefetch = 0 : i64, scratch_operands = 0 : i64, tpu.core_type = #tpu.core_type<tc>} {
    %c0 = arith.constant 0 : index
    %c0_0 = arith.constant 0 : index
    %0 = vector.load %arg0[%c0, %c0_0] : memref<8x128xf32, #tpu.memory_space<vmem>>, vector<8x128xf32>
    %c0_1 = arith.constant 0 : index
    %c0_2 = arith.constant 0 : index
    %1 = vector.load %arg1[%c0_1, %c0_2] : memref<128x128xf32, #tpu.memory_space<vmem>>, vector<128x128xf32>
    %cst = arith.constant dense<0.000000e+00> : vector<8x128xf32>
    %2 = tpu.matmul %0, %1, %cst {dimension_numbers = #tpu.dot_dimension_numbers<[1], [0], [0], [1], [0, 0, 1, 1], [], []>} : vector<8x128xf32>, vector<128x128xf32>, vector<8x128xf32> -> vector<8x128xf32>
    %cst_3 = arith.constant dense<0.000000e+00> : vector<128xf32>
    %3 = vector.multi_reduction <add>, %2, %cst_3 [0] : vector<8x128xf32> to vector<128xf32>
    %4 = vector.shape_cast %3 : vector<128xf32> to vector<1x128xf32>
    %cst_4 = arith.constant 1.250000e-01 : f32
    %5 = vector.broadcast %cst_4 : f32 to vector<1x128xf32>
    %6 = arith.mulf %4, %5 : vector<1x128xf32>
    %7 = arith.mulf %2, %2 : vector<8x128xf32>
    %cst_5 = arith.constant dense<0.000000e+00> : vector<128xf32>
    %8 = vector.multi_reduction <add>, %7, %cst_5 [0] : vector<8x128xf32> to vector<128xf32>
    %9 = vector.shape_cast %8 : vector<128xf32> to vector<1x128xf32>
    %cst_6 = arith.constant 1.250000e-01 : f32
    %10 = vector.broadcast %cst_6 : f32 to vector<1x128xf32>
    %11 = arith.mulf %9, %10 : vector<1x128xf32>
    %12 = arith.mulf %6, %6 : vector<1x128xf32>
    %13 = arith.subf %11, %12 : vector<1x128xf32>
    %cst_7 = arith.constant 0.000000e+00 : f32
    %14 = vector.broadcast %cst_7 : f32 to vector<1x128xf32>
    %15 = arith.maximumf %13, %14 : vector<1x128xf32>
    %cst_8 = arith.constant 9.99999974E-6 : f32
    %16 = vector.broadcast %cst_8 : f32 to vector<1x128xf32>
    %17 = arith.addf %15, %16 : vector<1x128xf32>
    %18 = math.rsqrt %17 : vector<1x128xf32>
    %c0_9 = arith.constant 0 : index
    %c0_10 = arith.constant 0 : index
    %19 = vector.load %arg2[%c0_9, %c0_10] : memref<1x128xf32, #tpu.memory_space<vmem>>, vector<1x128xf32>
    %20 = arith.mulf %18, %19 : vector<1x128xf32>
    %c0_11 = arith.constant 0 : index
    %c0_12 = arith.constant 0 : index
    %21 = vector.load %arg3[%c0_11, %c0_12] : memref<1x128xf32, #tpu.memory_space<vmem>>, vector<1x128xf32>
    %22 = arith.mulf %6, %20 : vector<1x128xf32>
    %23 = arith.subf %21, %22 : vector<1x128xf32>
    %24 = vector.broadcast %20 : vector<1x128xf32> to vector<8x128xf32>
    %25 = arith.mulf %2, %24 : vector<8x128xf32>
    %26 = vector.broadcast %23 : vector<1x128xf32> to vector<8x128xf32>
    %27 = arith.addf %25, %26 : vector<8x128xf32>
    %cst_13 = arith.constant 0.000000e+00 : f32
    %28 = vector.broadcast %cst_13 : f32 to vector<8x128xf32>
    %29 = arith.maximumf %27, %28 : vector<8x128xf32>
    %c0_14 = arith.constant 0 : index
    %c0_15 = arith.constant 0 : index
    %30 = vector.load %arg4[%c0_14, %c0_15] : memref<128x128xf32, #tpu.memory_space<vmem>>, vector<128x128xf32>
    %cst_16 = arith.constant dense<0.000000e+00> : vector<8x128xf32>
    %31 = tpu.matmul %29, %30, %cst_16 {dimension_numbers = #tpu.dot_dimension_numbers<[1], [0], [0], [1], [0, 0, 1, 1], [], []>} : vector<8x128xf32>, vector<128x128xf32>, vector<8x128xf32> -> vector<8x128xf32>
    %c0_17 = arith.constant 0 : index
    %c0_18 = arith.constant 0 : index
    %32 = vector.load %arg5[%c0_17, %c0_18] : memref<1x128xf32, #tpu.memory_space<vmem>>, vector<1x128xf32>
    %33 = vector.broadcast %32 : vector<1x128xf32> to vector<8x128xf32>
    %34 = arith.addf %31, %33 : vector<8x128xf32>
    %cst_19 = arith.constant 0.000000e+00 : f32
    %35 = vector.broadcast %cst_19 : f32 to vector<8x128xf32>
    %36 = arith.maximumf %34, %35 : vector<8x128xf32>
    %c0_20 = arith.constant 0 : index
    %c0_21 = arith.constant 0 : index
    %37 = vector.load %arg6[%c0_20, %c0_21] : memref<128x128xf32, #tpu.memory_space<vmem>>, vector<128x128xf32>
    %cst_22 = arith.constant dense<0.000000e+00> : vector<8x128xf32>
    %38 = tpu.matmul %36, %37, %cst_22 {dimension_numbers = #tpu.dot_dimension_numbers<[1], [0], [0], [1], [0, 0, 1, 1], [], []>} : vector<8x128xf32>, vector<128x128xf32>, vector<8x128xf32> -> vector<8x128xf32>
    %c0_23 = arith.constant 0 : index
    %c0_24 = arith.constant 0 : index
    %39 = vector.load %arg7[%c0_23, %c0_24] : memref<1x128xf32, #tpu.memory_space<vmem>>, vector<1x128xf32>
    %40 = vector.broadcast %39 : vector<1x128xf32> to vector<8x128xf32>
    %41 = arith.addf %38, %40 : vector<8x128xf32>
    %cst_25 = arith.constant dense<0xFF800000> : vector<8xf32>
    %42 = vector.multi_reduction <maximumf>, %41, %cst_25 [1] : vector<8x128xf32> to vector<8xf32>
    %43 = vector.shape_cast %42 : vector<8xf32> to vector<8x1xf32>
    %44 = vector.broadcast %43 : vector<8x1xf32> to vector<8x128xf32>
    %45 = arith.subf %41, %44 : vector<8x128xf32>
    %46 = math.exp %45 : vector<8x128xf32>
    %cst_26 = arith.constant dense<0.000000e+00> : vector<8xf32>
    %47 = vector.multi_reduction <add>, %46, %cst_26 [1] : vector<8x128xf32> to vector<8xf32>
    %48 = vector.shape_cast %47 : vector<8xf32> to vector<8x1xf32>
    %49 = math.log %48 : vector<8x1xf32>
    %50 = vector.broadcast %49 : vector<8x1xf32> to vector<8x128xf32>
    %51 = arith.subf %45, %50 : vector<8x128xf32>
    %c0_27 = arith.constant 0 : index
    %c0_28 = arith.constant 0 : index
    %52 = vector.load %arg8[%c0_27, %c0_28] : memref<8x128xf32, #tpu.memory_space<vmem>>, vector<8x128xf32>
    tpu.vector_store %arg8[%c0_27, %c0_28], %51 {strides = array<i32>} : memref<8x128xf32, #tpu.memory_space<vmem>>, vector<8x128xf32>,
    return
  }
}

</mosaic_0001>

<bundles_post_ra>
// kernel: modelc_forward.1
= control target key start
LH: loop header
LB: loop body
LE: loop exit
PB: predicated region body
PF: predicated region fallthrough
CT: control target
= control target key end

     0   :  { %13 = vsyncpa [#allocation3], 0  ;;  %s909_s0 = inlined_call_operand.vmem [shape: f32[8,128], index: 0, kind: input, shape index: {}]   ;;  %s910_s1 = inlined_call_operand.hbm [shape: f32[128,128], index: 1, kind: input, shape index: {}]   ;;  %s911_s2 = inlined_call_operand.vmem [shape: f32[1,128], index: 2, kind: input, shape index: {}]   ;;  %s912_s3 = inlined_call_operand.vmem [shape: f32[1,128], index: 3, kind: input, shape index: {}]   ;;  %s913_s4 = inlined_call_operand.hbm [shape: f32[128,128], index: 4, kind: input, shape index: {}]   ;;  %s914_s5 = inlined_call_operand.vmem [shape: f32[1,128], index: 5, kind: input, shape index: {}]   ;;  %s915_s6 = inlined_call_operand.hbm [shape: f32[128,128], index: 6, kind: input, shape index: {}]   ;;  %s916_s7 = inlined_call_operand.vmem [shape: f32[1,128], index: 7, kind: input, shape index: {}]   ;;  %s917_s8 = inlined_call_operand.hbm [shape: f32[8,128], index: 8, kind: output, shape index: {}]  }
   0x1   :  { %14 = vsyncpa [#allocation6], 0 }
   0x2   :  { %15 = vsyncpa [#allocation4], 0  ;;  %s749_s27 = smov [#allocation5]   ;;  %s750_s29 = smov [#allocation2]  }
   0x3   :  { %s39_s28 = sshll.u32 %s749_s27, 4  ;;  %s23_s30 = sshll.u32 %s750_s29, 4  ;;  %s40_s28 = int_to_ptr.vmem [resolvable:$true] %s39_s28  ;;  %s803_s30 = int_to_ptr.vmem [resolvable:$true] %s23_s30 }
   0x4   :  { %s655_s11 = scalar_lea.hbm %s913_s4, 2048 }
   0x5   :  { %p656_p0 = scmp.ne.s32.totalorder %s913_s4, %s655_s11  ;;  %p659_p1 = scmp.lt.u32.totalorder %s655_s11, %s913_s4 }
   0x7   :  { %p661_p2 = pnand %p659_p1, %p656_p0 }
   0x9   :  { %664 = shalt.err (!%p661_p2)
}
   0xa   :  { %s665_s16 = scalar_lea.vmem %s40_s28, 2048  ;;  %p670_p4 = scmp.lt.s32.totalorder %s40_s28, %s40_s28 }
   0xb   :  { %p666_p3 = scmp.ne.s32.totalorder %s40_s28, %s665_s16  ;;  %p671_p5 = scmp.lt.s32.totalorder %s665_s16, %s665_s16 }
   0xd   :  { %p672_p6 = por %p671_p5, %p670_p4 }
   0xf   :  { %p673_p7 = pnand %p672_p6, %p666_p3 }
  0x11   :  { %676 = shalt.err (!%p673_p7)
}
  0x12   :  { %s751_s17 = smov 128   ;;  %s752_s18 = smov 8  }
  0x13   :  { %45 = dma.hbm_to_vmem [thread:$0]  %s913_s4, 2048, %s40_s28, [#allocation6], %s751_s17, %s751_s17, %s752_s18  }
  0x14   :  { %s677_s23 = scalar_lea.hbm %s910_s1, 2048 }
  0x15   :  { %p678_p8 = scmp.ne.s32.totalorder %s910_s1, %s677_s23  ;;  %p681_p9 = scmp.lt.u32.totalorder %s677_s23, %s910_s1 }
  0x17   :  { %p683_p10 = pnand %p681_p9, %p678_p8 }
  0x19   :  { %686 = shalt.err (!%p683_p10)
}
  0x1a   :  { %s687_s29 = scalar_lea.vmem %s803_s30, 2048  ;;  %p692_p12 = scmp.lt.s32.totalorder %s803_s30, %s803_s30 }
  0x1b   :  { %p688_p11 = scmp.ne.s32.totalorder %s803_s30, %s687_s29  ;;  %p693_p13 = scmp.lt.s32.totalorder %s687_s29, %s687_s29 }
  0x1d   :  { %p694_p0 = por %p693_p13, %p692_p12 }
  0x1f   :  { %p695_p1 = pnand %p694_p0, %p688_p11 }
  0x21   :  { %698 = shalt.err (!%p695_p1)
}
  0x22   :  { %29 = dma.hbm_to_vmem [thread:$0]  %s910_s1, 2048, %s803_s30, [#allocation3], %s751_s17, %s751_s17, %s752_s18  }
  0x23   :  { %s753_s9 = smov [#allocation7]   ;;  %s699_s13 = scalar_lea.hbm %s915_s6, 2048 }
  0x24   :  { %s53_s10 = sshll.u32 %s753_s9, 4  ;;  %p700_p2 = scmp.ne.s32.totalorder %s915_s6, %s699_s13  ;;  %s54_s10 = int_to_ptr.vmem [resolvable:$true] %s53_s10 }
  0x25   :  { %p703_p3 = scmp.lt.u32.totalorder %s699_s13, %s915_s6 }
  0x27   :  { %p705_p4 = pnand %p703_p3, %p700_p2 }
  0x29   :  { %708 = shalt.err (!%p705_p4)
}
  0x2a   :  { %s709_s20 = scalar_lea.vmem %s54_s10, 2048  ;;  %p714_p6 = scmp.lt.s32.totalorder %s54_s10, %s54_s10 }
  0x2b   :  { %p710_p5 = scmp.ne.s32.totalorder %s54_s10, %s709_s20  ;;  %p715_p7 = scmp.lt.s32.totalorder %s709_s20, %s709_s20 }
  0x2d   :  { %p716_p8 = por %p715_p7, %p714_p6 }
  0x2f   :  { %p717_p9 = pnand %p716_p8, %p710_p5 }
  0x31   :  { %720 = shalt.err (!%p717_p9)
}
  0x32   :  { %59 = dma.hbm_to_vmem [thread:$0]  %s915_s6, 2048, %s54_s10, [#allocation6], %s751_s17, %s751_s17, %s752_s18  }
  0x33   :  { %743 = dma.done.wait [#allocation3], 2048  }
  0x34   :  { %744 = vsyncadd [#allocation3], 4294965248 }
  0x35   :  { %745 = dma.done.wait [#allocation6], 4096  }
  0x36   :  { %746 = vsyncadd [#allocation6], 4294963200  ;;  %v754_v0 = vmov 0.0|0.0   ;;  %vm755_vm0 = vmmov 0   ;;  %v756_v1 = vmov 0.0   ;;  %v72_v2 = vld [vmem:[#allocation2] sm:$0xff] }
  0x37   :  { %568 = vmatprep.subr.bf16.mxu0 %v754_v0  ;;  %495 = vmatprep.mubr.msk.f32.mxu0 %vm755_vm0, %v756_v1  ;;  %v73_v3 = vld [vmem:[#allocation2 + $0x8] sm:$0xff]  ;;  %v74_v4 = vld [vmem:[#allocation2 + $0x10] sm:$0xff]  ;;  %v75_v6 = vld [vmem:[#allocation2 + $0x18] sm:$0xff] }
  0x38   :  { %592 = vmatprep.subr.bf16.mxu1 %v754_v0  ;;  %530 = vmatprep.mubr.msk.f32.mxu1 %vm755_vm0, %v756_v1  ;;  %v569_v5 = vpack.c.bf16 %v73_v3, %v72_v2  ;;  %v572_v7 = vpack.c.bf16 %v75_v6, %v74_v4  ;;  %v76_v8 = vld [vmem:[#allocation2 + $0x20] sm:$0xff]  ;;  %v77_v9 = vld [vmem:[#allocation2 + $0x28] sm:$0xff]  ;;  %v78_v11 = vld [vmem:[#allocation2 + $0x30] sm:$0xff] }
  0x39   :  { %v575_v10 = vpack.c.bf16 %v77_v9, %v76_v8  ;;  %v79_v12 = vld [vmem:[#allocation2 + $0x38] sm:$0xff]  ;;  %v80_v14 = vld [vmem:[#allocation2 + $0x40] sm:$0xff]  ;;  %v81_v15 = vld [vmem:[#allocation2 + $0x48] sm:$0xff] }
  0x3a   :  { %570 = vmatpush3.bf16.msra.mxu0 %v569_v5  ;;  %v578_v13 = vpack.c.bf16 %v79_v12, %v78_v11  ;;  %v581_v16 = vpack.c.bf16 %v81_v15, %v80_v14  ;;  %v82_v17 = vld [vmem:[#allocation2 + $0x50] sm:$0xff]  ;;  %v83_v18 = vld [vmem:[#allocation2 + $0x58] sm:$0xff]  ;;  %v84_v20 = vld [vmem:[#allocation2 + $0x60] sm:$0xff] }
  0x3b   :  { %571 = vmatprep.subr.bf16.mxu0 %v754_v0  ;;  %v584_v19 = vpack.c.bf16 %v83_v18, %v82_v17  ;;  %v85_v21 = vld [vmem:[#allocation2 + $0x68] sm:$0xff]  ;;  %v86_v23 = vld [vmem:[#allocation2 + $0x70] sm:$0xff]  ;;  %v87_v24 = vld [vmem:[#allocation2 + $0x78] sm:$0xff] }
  0x3c   :  { %v587_v22 = vpack.c.bf16 %v85_v21, %v84_v20  ;;  %v590_v25 = vpack.c.bf16 %v87_v24, %v86_v23  ;;  %v71_v26 = vld [vmem:[%s909_s0] sm:$0xff]  ;;  %v197_v28 = vld [vmem:[#allocation5 + $0x8] sm:$0xff]  ;;  %v198_v30 = vld [vmem:[#allocation5 + $0x10] sm:$0xff] }
  0x3d   :  { %v196_v27 = vld [vmem:[#allocation5] sm:$0xff]  ;;  %v199_v31 = vld [vmem:[#allocation5 + $0x18] sm:$0xff]  ;;  %v201_v34 = vld [vmem:[#allocation5 + $0x28] sm:$0xff] }
  0x3e   :  { %573 = vmatpush3.bf16.msra.mxu0 %v572_v7  ;;  %v593_v29 = vpack.c.bf16 %v197_v28, %v196_v27  ;;  %v596_v32 = vpack.c.bf16 %v199_v31, %v198_v30  ;;  %v200_v33 = vld [vmem:[#allocation5 + $0x20] sm:$0xff]  ;;  %v202_v36 = vld [vmem:[#allocation5 + $0x30] sm:$0xff]  ;;  %v203_v37 = vld [vmem:[#allocation5 + $0x38] sm:$0xff] }
  0x3f   :  { %574 = vmatprep.subr.bf16.mxu0 %v754_v0  ;;  %v599_v35 = vpack.c.bf16 %v201_v34, %v200_v33  ;;  %v602_v38 = vpack.c.bf16 %v203_v37, %v202_v36  ;;  %v204_v39 = vld [vmem:[#allocation5 + $0x40] sm:$0xff]  ;;  %v205_v40 = vld [vmem:[#allocation5 + $0x48] sm:$0xff]  ;;  %v206_v42 = vld [vmem:[#allocation5 + $0x50] sm:$0xff] }
  0x40   :  { %594 = vmatpush3.bf16.msra.mxu1 %v593_v29  ;;  %v605_v41 = vpack.c.bf16 %v205_v40, %v204_v39  ;;  %v207_v43 = vld [vmem:[#allocation5 + $0x58] sm:$0xff]  ;;  %v208_v45 = vld [vmem:[#allocation5 + $0x60] sm:$0xff]  ;;  %v209_v46 = vld [vmem:[#allocation5 + $0x68] sm:$0xff]  ;;  %v183_v29 = vlaneseq }
  0x41   :  { %595 = vmatprep.subr.bf16.mxu1 %v754_v0  ;;  %v608_v44 = vpack.c.bf16 %v207_v43, %v206_v42  ;;  %v611_v47 = vpack.c.bf16 %v209_v46, %v208_v45  ;;  %v210_v48 = vld [vmem:[#allocation5 + $0x70] sm:$0xff]  ;;  %v211_v49 = vld [vmem:[#allocation5 + $0x78] sm:$0xff]  ;;  %v290_v51 = vld [vmem:[#allocation7] sm:$0xff] }
  0x42   :  { %576 = vmatpush3.bf16.msra.mxu0 %v575_v10  ;;  %v614_v50 = vpack.c.bf16 %v211_v49, %v210_v48  ;;  %v291_v52 = vld [vmem:[#allocation7 + $0x8] sm:$0xff]  ;;  %v292_v53 = vld [vmem:[#allocation7 + $0x10] sm:$0xff]  ;;  %v293_v55 = vld [vmem:[#allocation7 + $0x18] sm:$0xff]  ;;  %v184_v30 = vshrl.u32 %v183_v29, 7 }
  0x43   :  { %577 = vmatprep.subr.bf16.mxu0 %v754_v0  ;;  %v617_v54 = vpack.c.bf16 %v291_v52, %v290_v51  ;;  %v620_v56 = vpack.c.bf16 %v293_v55, %v292_v53  ;;  %v294_v57 = vld [vmem:[#allocation7 + $0x20] sm:$0xff]  ;;  %v295_v58 = vld [vmem:[#allocation7 + $0x28] sm:$0xff]  ;;  %v296_v60 = vld [vmem:[#allocation7 + $0x30] sm:$0xff] }
  0x44   :  { %597 = vmatpush3.bf16.msra.mxu1 %v596_v32  ;;  %v623_v59 = vpack.c.bf16 %v295_v58, %v294_v57  ;;  %v297_v61 = vld [vmem:[#allocation7 + $0x38] sm:$0xff]  ;;  %v298_v63 = vld [vmem:[#allocation7 + $0x40] sm:$0xff]  ;;  %v300_v3 = vld [vmem:[#allocation7 + $0x50] sm:$0xff]  ;;  %v185_v32 = vsub.s32 0, %v184_v30 }
  0x45   :  { %598 = vmatprep.subr.bf16.mxu1 %v754_v0  ;;  %v626_v62 = vpack.c.bf16 %v297_v61, %v296_v60  ;;  %v301_v4 = vld [vmem:[#allocation7 + $0x58] sm:$0xff]  ;;  %v302_v6 = vld [vmem:[#allocation7 + $0x60] sm:$0xff]  ;;  %v303_v7 = vld [vmem:[#allocation7 + $0x68] sm:$0xff] }
  0x46   :  { %579 = vmatpush3.bf16.msra.mxu0 %v578_v13  ;;  %v632_v5 = vpack.c.bf16 %v301_v4, %v300_v3  ;;  %v635_v8 = vpack.c.bf16 %v303_v7, %v302_v6  ;;  %v178_v31 = vld [vmem:[%s911_s2] sm:$0x1]  ;;  %v304_v43 = vld [vmem:[#allocation7 + $0x70] sm:$0xff] }
  0x47   :  { %580 = vmatprep.subr.bf16.mxu0 %v754_v0  ;;  %v410_v46 = vld [vmem:[%s914_s5] ss:$0 sm:$0xff]  ;;  %s757_s5 = smov [#allocation8]  }
  0x48   :  { %600 = vmatpush3.bf16.msra.mxu1 %v599_v35  ;;  %v180_v35 = vld [vmem:[%s912_s3] sm:$0x1]  ;;  %s400_s25 = sshll.u32 %s757_s5, 4  ;;  %s401_s25 = int_to_ptr.vmem [resolvable:$true] %s400_s25 }
  0x49   :  { %601 = vmatprep.subr.bf16.mxu1 %v754_v0  ;;  %v411_v51 = vld [vmem:[%s916_s7] ss:$0 sm:$0xff]  ;;  %s721_s7 = scalar_lea.vmem %s401_s25, 128  ;;  %p726_p11 = scmp.lt.s32.totalorder %s401_s25, %s401_s25 }
  0x4a   :  { %582 = vmatpush3.bf16.msra.mxu0 %v581_v16  ;;  %p722_p10 = scmp.ne.s32.totalorder %s401_s25, %s721_s7  ;;  %p727_p12 = scmp.lt.s32.totalorder %s721_s7, %s721_s7 }
  0x4b   :  { %583 = vmatprep.subr.bf16.mxu0 %v754_v0 }
  0x4c   :  { %603 = vmatpush3.bf16.msra.mxu1 %v602_v38  ;;  %p728_p13 = por %p727_p12, %p726_p11 }
  0x4d   :  { %604 = vmatprep.subr.bf16.mxu1 %v754_v0 }
  0x4e   :  { %585 = vmatpush3.bf16.msra.mxu0 %v584_v19  ;;  %p729_p0 = pnand %p728_p13, %p722_p10 }
  0x4f   :  { %586 = vmatprep.subr.bf16.mxu0 %v754_v0 }
  0x50   :  { %606 = vmatpush3.bf16.msra.mxu1 %v605_v41 }
  0x51   :  { %607 = vmatprep.subr.bf16.mxu1 %v754_v0 }
  0x52   :  { %588 = vmatpush3.bf16.msra.mxu0 %v587_v22 }
  0x53   :  { %589 = vmatprep.subr.bf16.mxu0 %v754_v0 }
  0x54   :  { %609 = vmatpush3.bf16.msra.mxu1 %v608_v44  ;;  %v305_v44 = vld [vmem:[#allocation7 + $0x78] sm:$0xff] }
  0x55   :  { %610 = vmatprep.subr.bf16.mxu1 %v754_v0  ;;  %v638_v45 = vpack.c.bf16 %v305_v44, %v304_v43 }
  0x56   :  { %591 = vmatpush3.bf16.msra.mxu0 %v590_v25 }
  0x57   :  { %616 = vmatprep.subr.bf16.mxu0 %v754_v0 }
  0x58   :  { %612 = vmatpush3.bf16.msra.mxu1 %v611_v47 }
  0x59   :  { %496 = vmatmul.mubr.f32.vlgmr.msra.gmra.mrb[0].mxu0 %v71_v26  ;;  %613 = vmatprep.subr.bf16.mxu1 %v754_v0 }
  0x5a   :  { %565 = vmatprep.mubr.msk.f32.mxu0 %vm755_vm0, %v756_v1  ;;  %618 = vmatpush3.bf16.msra.mxu0 %v617_v54  ;;  %v299_v1 = vld [vmem:[#allocation7 + $0x48] sm:$0xff] }
  0x5b   :  { %619 = vmatprep.subr.bf16.mxu0 %v754_v0  ;;  %v629_v2 = vpack.c.bf16 %v299_v1, %v298_v63 }
  0x5c   :  { %615 = vmatpush3.bf16.msra.mxu1 %v614_v50 }
  0x5e   :  { %621 = vmatpush3.bf16.msra.mxu0 %v620_v56 }
  0x5f   :  { %622 = vmatprep.subr.bf16.mxu0 %v754_v0 }
  0x62   :  { %624 = vmatpush3.bf16.msra.mxu0 %v623_v59 }
  0x63   :  { %625 = vmatprep.subr.bf16.mxu0 %v754_v0 }
  0x66   :  { %627 = vmatpush3.bf16.msra.mxu0 %v626_v62 }
  0x67   :  { %628 = vmatprep.subr.bf16.mxu0 %v754_v0 }
  0x6a   :  { %630 = vmatpush3.bf16.msra.mxu0 %v629_v2 }
  0x6b   :  { %631 = vmatprep.subr.bf16.mxu0 %v754_v0 }
  0x6e   :  { %633 = vmatpush3.bf16.msra.mxu0 %v632_v5 }
  0x6f   :  { %634 = vmatprep.subr.bf16.mxu0 %v754_v0 }
  0x72   :  { %636 = vmatpush3.bf16.msra.mxu0 %v635_v8 }
  0x73   :  { %637 = vmatprep.subr.bf16.mxu0 %v754_v0 }
  0x76   :  { %639 = vmatpush3.bf16.msra.mxu0 %v638_v45 }
 0x12c   :  { %v154_v9 = vpop.f32.mrb[0].mxu0 }
 0x12d   :  { %v158_v10 = vrot.slane %v154_v9, 4  ;;  %v165_v11 = vmul.f32 %v154_v9, %v154_v9  ;;  %v497_v12 = vpop.f32.mrb[1].mxu0 }
 0x12f   :  { %v159_v13 = vadd.f32 %v158_v10, %v154_v9  ;;  %v166_v14 = vrot.slane %v165_v11, 4 }
 0x131   :  { %v160_v15 = vrot.slane %v159_v13, 2  ;;  %v167_v16 = vadd.f32 %v166_v14, %v165_v11 }
 0x133   :  { %v161_v17 = vadd.f32 %v160_v15, %v159_v13  ;;  %v168_v18 = vrot.slane %v167_v16, 2 }
 0x135   :  { %v162_v19 = vrot.slane %v161_v17, 1  ;;  %v169_v20 = vadd.f32 %v168_v18, %v167_v16 }
 0x137   :  { %v163_v21 = vadd.f32 %v162_v19, %v161_v17  ;;  %v170_v22 = vrot.slane %v169_v20, 1 }
 0x139   :  { %v164_v23 = vmul.f32 0.125, %v163_v21  ;;  %v171_v24 = vadd.f32 %v170_v22, %v169_v20 }
 0x13b   :  { %v172_v25 = vmul.f32 0.125, %v171_v24  ;;  %v173_v26 = vmul.f32 %v164_v23, %v164_v23 }
 0x13d   :  { %v174_v27 = vsub.f32 %v172_v25, %v173_v26 }
 0x13f   :  { %v175_v0 = vmax.f32 %v174_v27, 0.0 }
 0x141   :  { %v176_v28 = vadd.f32 1e-05, %v175_v0 }
 0x143   :  { %649 = vrsqrt.f32 %v176_v28 }
 0x14d   :  { %v650_v33 = vpop.eup %649 }
 0x14e   :  { %v179_v34 = vmul.f32 %v650_v33, %v178_v31 }
 0x150   :  { %v186_v36 = vrot.slane %v179_v34, %v185_v32  ;;  %v181_v37 = vmul.f32 %v179_v34, %v164_v23 }
 0x152   :  { %v182_v38 = vsub.f32 %v180_v35, %v181_v37  ;;  %v187_v39 = vmul.f32 %v186_v36, %v154_v9 }
 0x154   :  { %v192_v40 = vrot.slane %v182_v38, %v185_v32 }
 0x156   :  { %v194_v41 = vadd.f32 %v192_v40, %v187_v39 }
 0x158   :  { %v195_v42 = vmax.f32 %v194_v41, 0.0 }
 0x15a   :  { %531 = vmatmul.mubr.f32.vlgmr.msra.gmra.mrb[0].mxu1 %v195_v42 }
 0x22d   :  { %v285_v47 = vpop.f32.mrb[0].mxu1 }
 0x22e   :  { %v286_v48 = vadd.f32 %v410_v46, %v285_v47  ;;  %v532_v49 = vpop.f32.mrb[1].mxu1 }
 0x230   :  { %v289_v50 = vmax.f32 %v286_v48, 0.0 }
 0x232   :  { %566 = vmatmul.mubr.f32.vlgmr.msra.gmra.mrb[2].mxu0 %v289_v50 }
 0x305   :  { %v379_v52 = vpop.f32.mrb[2].mxu0 }
 0x306   :  { %v380_v53 = vadd.f32 %v411_v51, %v379_v52  ;;  %v567_v54 = vpop.f32.mrb[3].mxu0 }
 0x308   :  { %383 = vmax.xlane.f32.xlu0 %v380_v53 }
 0x395   :  { %v384_v55 = vpop.xlane.xlu0 %383 }
 0x396   :  { %v385_v56 = vsub.f32 %v380_v53, %v384_v55 }
 0x398   :  { %v386_v57 = vmul.f32 1.442695, %v385_v56 }
 0x39a   :  { %651 = vpow2.f32 %v386_v57 }
 0x3a4   :  { %v652_v58 = vpop.eup %651 }
 0x3a5   :  { %388 = vadd.xlane.f32.xlu0 %v652_v58 }
 0x432   :  { %v389_v59 = vpop.xlane.xlu0 %388 }
 0x433   :  { %653 = vlog2.f32 %v389_v59 }
 0x43d   :  { %v654_v60 = vpop.eup %653 }
 0x43e   :  { %v391_v61 = vmul.f32 0.6931472, %v654_v60 }
 0x440   :  { %v392_v62 = vsub.f32 %v385_v56, %v391_v61 }
 0x442   :  { %393 = vst [vmem:[#allocation8] sm:$0xff] %v392_v62 }
 0x443   :  { %732 = shalt.err (!%p729_p0)
}
 0x444   :  { %s733_s29 = scalar_lea.hbm %s917_s8, 128 }
 0x445   :  { %p734_p1 = scmp.ne.s32.totalorder %s917_s8, %s733_s29  ;;  %p737_p2 = scmp.lt.u32.totalorder %s733_s29, %s917_s8 }
 0x447   :  { %p739_p3 = pnand %p737_p2, %p734_p1 }
 0x449   :  { %742 = shalt.err (!%p739_p3)
}
 0x44a   :  { %403 = dma.vmem_to_hbm [thread:$0]  %s401_s25, 128, %s917_s8, [#allocation4]  }
 0x44b   :  { %747 = dma.done.wait [#allocation4], 128  }
 0x44c   :  { %748 = vsyncadd [#allocation4], 4294967168 }
 0x44d   :  { %407 = vsyncpa [#allocation3], 1 }
 0x44e   :  { %408 = vsyncpa [#allocation6], 1 }
 0x44f   :  { %409 = vsyncpa [#allocation4], 1 }

</bundles_post_ra>
